<compile_context>
chip_gen: v5e
topology: v5e:2x2
jax: 0.10.0
libtpu: 0.0.40
codegen_flags: <defaults>
</compile_context>

<pallas_src>
import jax
import jax.numpy as jnp
from jax.experimental import pallas as pl
from jax.experimental.pallas import tpu as pltpu


def _fc_layer_kernel(x_ref, w_ref, shift_ref, o_ref, acc_ref):
    k = pl.program_id(2)

    @pl.when(k == 0)
    def _():
        acc_ref[...] = jnp.zeros_like(acc_ref)

    # MXU matmul on bf16 tiles with f32 accumulation.
    acc_ref[...] += jnp.dot(x_ref[...], w_ref[...],
                            preferred_element_type=jnp.float32)

    @pl.when(k == pl.num_programs(2) - 1)
    def _():
        # Fused epilogue (VPU): folded bias/BN shift + ReLU, cast at the store.
        z = acc_ref[...] + shift_ref[...]
        o_ref[...] = jnp.maximum(z, 0.0).astype(o_ref.dtype)


def _round_up(x, m):
    return ((x + m - 1) // m) * m


def fold_layer_params(w_t, bias, gamma, beta, running_mean, running_var, eps=1e-3):
    """Fold Linear bias + eval-mode BatchNorm1d into (W_folded, shift)."""
    scale = gamma / jnp.sqrt(running_var + eps)
    bn_shift = beta - running_mean * scale
    w_folded = w_t * scale[None, :]
    shift = (bias.reshape(-1) * scale + bn_shift).reshape(1, -1)
    return dict(w=w_folded, shift=shift)


def fc_layer_forward(x, w_folded, shift, *, out_dtype=jnp.float32,
                     block_b=256, block_n=512, block_k=512):
    """One fused Linear + folded-BatchNorm(eval) + ReLU layer."""
    B, K = x.shape
    K2, N = w_folded.shape
    assert K == K2 and shift.shape == (1, N)

    block_b = _round_up(block_b, 8)
    block_n = _round_up(block_n, 128)
    block_k = _round_up(block_k, 128)

    # Pad B/N/K up to tile multiples (lane-dense output, aligned weight DMAs).
    tb = min(block_b, _round_up(B, 8))
    Bp = _round_up(B, tb)
    Np = _round_up(N, 128)
    tn = min(block_n, Np)
    Np = _round_up(Np, tn)
    Kp = _round_up(K, 128)
    tk = min(block_k, Kp)
    Kp = _round_up(Kp, tk)

    xb = jnp.pad(x.astype(jnp.bfloat16), ((0, Bp - B), (0, Kp - K)))
    wb = jnp.pad(w_folded.astype(jnp.bfloat16), ((0, Kp - K), (0, Np - N)))
    sh = jnp.pad(shift.astype(jnp.float32), ((0, 0), (0, Np - N)))

    gj, gi, gk = Np // tn, Bp // tb, Kp // tk
    out_itemsize = jnp.dtype(out_dtype).itemsize

    # Double-buffered input/output tiles + f32 accumulator + headroom.
    vmem_bytes = (2 * (tb * tk * 2 + tk * tn * 2 + 8 * tn * 4
                       + tb * tn * out_itemsize)
                  + tb * tn * 4 + (4 << 20))
    vmem_bytes = min(int(vmem_bytes), 128 << 20)

    # Weight is streamed once when K is untiled (block index constant across
    # the inner batch axis), else once per batch tile.
    w_reads = 1 if gk == 1 else gi
    cost = pl.CostEstimate(
        flops=2 * Bp * Kp * Np,
        transcendentals=0,
        bytes_accessed=(gj * Bp * Kp * 2 + w_reads * Kp * Np * 2
                        + Np * 4 + Bp * Np * out_itemsize),
    )

    out = pl.pallas_call(
        _fc_layer_kernel,
        out_shape=jax.ShapeDtypeStruct((Bp, Np), out_dtype),
        grid=(gj, gi, gk),                                   # N outer, B mid, K inner
        in_specs=[
            pl.BlockSpec((tb, tk), lambda j, i, k: (i, k)),  # activations
            pl.BlockSpec((tk, tn), lambda j, i, k: (k, j)),  # folded weights
            pl.BlockSpec((1, tn), lambda j, i, k: (0, j)),   # folded bias/BN shift
        ],
        out_specs=pl.BlockSpec((tb, tn), lambda j, i, k: (i, j)),
        scratch_shapes=[pltpu.VMEM((tb, tn), jnp.float32)],
        compiler_params=pltpu.CompilerParams(
            dimension_semantics=("parallel", "parallel", "arbitrary"),
            vmem_limit_bytes=vmem_bytes,
        ),
        cost_estimate=cost,
    )(xb, wb, sh)
    return out[:B, :N]


def fc_layers_forward(x, onehot_cats, layer_params, inject_covariates=True,
                      block_b=256, block_n=512, block_k=512):
    """Mirror of FCLayers.forward for 2-D input in eval mode."""
    # TODO(synk): training-mode BatchNorm1d (batch statistics + running-stat
    #             update) and training-mode Dropout masks are not implemented;
    #             eval-mode semantics only (running stats folded, dropout=id).
    # TODO(synk): the 3-D input path (per-slice BatchNorm over x.dim()==3) is
    #             not implemented.
    h = x
    n_layers = len(layer_params)
    for i, p in enumerate(layer_params):
        if (i == 0 or inject_covariates) and onehot_cats:
            h = jnp.concatenate([h.astype(jnp.float32), *onehot_cats], axis=-1)
        out_dtype = jnp.float32 if i == n_layers - 1 else jnp.bfloat16
        h = fc_layer_forward(h, p["w"], p["shift"], out_dtype=out_dtype,
                             block_b=block_b, block_n=block_n, block_k=block_k)
    return h


def _reference(x, onehot_cats, layer_params, inject_covariates=True):
    """Precision-matched JAX reference (same bf16 casts, f32 accumulation)."""
    h = x
    n_layers = len(layer_params)
    for i, p in enumerate(layer_params):
        if (i == 0 or inject_covariates) and onehot_cats:
            h = jnp.concatenate([h.astype(jnp.float32), *onehot_cats], axis=-1)
        z = jnp.dot(h.astype(jnp.bfloat16), p["w"].astype(jnp.bfloat16),
                    preferred_element_type=jnp.float32) + p["shift"]
        h = jnp.maximum(z, 0.0)
        if i != n_layers - 1:
            h = h.astype(jnp.bfloat16)
    return h


if __name__ == "__main__":
    # Small shapes consistent with FCLayers: x is (batch, n_in), one categorical
    # covariate with 4 categories, 2 layers, hidden=128, out=200 (exercises the
    # 128-padding of N and the K-reduction grid axis on layer 1).
    B, n_in, n_hidden, n_out = 16, 32, 128, 200
    n_layers = 2
    n_cat_list = [4]
    inject_covariates = True

    key = jax.random.PRNGKey(0)
    keys = iter(jax.random.split(key, 32))

    x = jax.random.normal(next(keys), (B, n_in), dtype=jnp.float32)
    cat = jax.random.randint(next(keys), (B,), 0, n_cat_list[0])
    onehot_cats = [jax.nn.one_hot(cat, n_cat_list[0], dtype=jnp.float32)]
    cat_dim = sum(n_cat_list)

    layers_dim = [n_in] + (n_layers - 1) * [n_hidden] + [n_out]
    layer_params = []
    for i, (d_in, d_out) in enumerate(zip(layers_dim[:-1], layers_dim[1:])):
        inject = (i == 0) or inject_covariates
        d_in_tot = d_in + cat_dim * int(inject)
        w_t = jax.random.normal(next(keys), (d_in_tot, d_out), jnp.float32) * 0.1
        bias = jax.random.normal(next(keys), (1, d_out), jnp.float32) * 0.1
        gamma = 1.0 + 0.1 * jax.random.normal(next(keys), (d_out,), jnp.float32)
        beta = 0.1 * jax.random.normal(next(keys), (d_out,), jnp.float32)
        r_mean = 0.1 * jax.random.normal(next(keys), (d_out,), jnp.float32)
        r_var = jnp.abs(jax.random.normal(next(keys), (d_out,), jnp.float32)) + 0.5
        layer_params.append(
            fold_layer_params(w_t, bias, gamma, beta, r_mean, r_var, eps=0.001))

    # Small tiles so the demo exercises the full (N, B, K) grid:
    #   layer 0: grid=(1, 2, 1); layer 1: grid=(2, 2, 2) including the K
    #   accumulator path.  Production defaults are (256, 512, 512).
    y = jax.block_until_ready(
        fc_layers_forward(x, onehot_cats, layer_params,
                          inject_covariates=inject_covariates,
                          block_b=8, block_n=128, block_k=128)
    )

    y_ref = _reference(x, onehot_cats, layer_params,
                       inject_covariates=inject_covariates)
    assert y.shape == (B, n_out)
    assert jnp.allclose(y, y_ref, rtol=1e-2, atol=1e-2), \
        float(jnp.max(jnp.abs(y - y_ref)))
    print("KERNEL_OK")
</pallas_src>

<mosaic_0001>
module attributes {stable_mosaic.version = 11 : i64} {
  func.func @_fc_layer_kernel(%arg0: i32, %arg1: i32, %arg2: i32, %arg3: memref<8x128xbf16, #tpu.memory_space<vmem>>, %arg4: memref<128x128xbf16, #tpu.memory_space<vmem>>, %arg5: memref<1x128xf32, #tpu.memory_space<vmem>>, %arg6: memref<8x128xbf16, #tpu.memory_space<vmem>>, %arg7: memref<8x128xf32, #tpu.memory_space<vmem>>) attributes {dimension_semantics = [#tpu.dimension_semantics<parallel>, #tpu.dimension_semantics<parallel>, #tpu.dimension_semantics<arbitrary>], iteration_bounds = array<i64: 1, 2, 1>, scalar_prefetch = 0 : i64, scratch_operands = 1 : i64, tpu.core_type = #tpu.core_type<tc>, window_params = [{transform_indices = @transform_0, window_bounds = array<i64: 8, 128>}, {transform_indices = @transform_1, window_bounds = array<i64: 128, 128>}, {transform_indices = @transform_2, window_bounds = array<i64: 1, 128>}, {transform_indices = @transform_3, window_bounds = array<i64: 8, 128>}]} {
    %c0_i32 = arith.constant 0 : i32
    %0 = arith.cmpi eq, %arg2, %c0_i32 : i32
    %1 = arith.extui %0 : i1 to i32
    %c0_i32_0 = arith.constant 0 : i32
    %2 = arith.cmpi ne, %1, %c0_i32_0 : i32
    scf.if %2 {
      %cst_10 = arith.constant 0.000000e+00 : f32
      %12 = vector.broadcast %cst_10 : f32 to vector<8x128xf32>
      %c0_11 = arith.constant 0 : index
      %c0_12 = arith.constant 0 : index
      %13 = vector.load %arg7[%c0_11, %c0_12] : memref<8x128xf32, #tpu.memory_space<vmem>>, vector<8x128xf32>
      tpu.vector_store %arg7[%c0_11, %c0_12], %12 {strides = array<i32>} : memref<8x128xf32, #tpu.memory_space<vmem>>, vector<8x128xf32>,
    } else {
    }
    %c0 = arith.constant 0 : index
    %c0_1 = arith.constant 0 : index
    %3 = vector.load %arg7[%c0, %c0_1] : memref<8x128xf32, #tpu.memory_space<vmem>>, vector<8x128xf32>
    %c0_2 = arith.constant 0 : index
    %c0_3 = arith.constant 0 : index
    %4 = vector.load %arg3[%c0_2, %c0_3] : memref<8x128xbf16, #tpu.memory_space<vmem>>, vector<8x128xbf16>
    %c0_4 = arith.constant 0 : index
    %c0_5 = arith.constant 0 : index
    %5 = vector.load %arg4[%c0_4, %c0_5] : memref<128x128xbf16, #tpu.memory_space<vmem>>, vector<128x128xbf16>
    %cst = arith.constant dense<0.000000e+00> : vector<8x128xf32>
    %6 = tpu.matmul %4, %5, %cst {dimension_numbers = #tpu.dot_dimension_numbers<[1], [0], [0], [1], [0, 0, 1, 1], [], []>} : vector<8x128xbf16>, vector<128x128xbf16>, vector<8x128xf32> -> vector<8x128xf32>
    %7 = arith.addf %3, %6 : vector<8x128xf32>
    %c0_6 = arith.constant 0 : index
    %c0_7 = arith.constant 0 : index
    %8 = vector.load %arg7[%c0_6, %c0_7] : memref<8x128xf32, #tpu.memory_space<vmem>>, vector<8x128xf32>
    tpu.vector_store %arg7[%c0_6, %c0_7], %7 {strides = array<i32>} : memref<8x128xf32, #tpu.memory_space<vmem>>, vector<8x128xf32>,
    %c0_i32_8 = arith.constant 0 : i32
    %9 = arith.cmpi eq, %arg2, %c0_i32_8 : i32
    %10 = arith.extui %9 : i1 to i32
    %c0_i32_9 = arith.constant 0 : i32
    %11 = arith.cmpi ne, %10, %c0_i32_9 : i32
    scf.if %11 {
      %c0_10 = arith.constant 0 : index
      %c0_11 = arith.constant 0 : index
      %12 = vector.load %arg7[%c0_10, %c0_11] : memref<8x128xf32, #tpu.memory_space<vmem>>, vector<8x128xf32>
      %c0_12 = arith.constant 0 : index
      %c0_13 = arith.constant 0 : index
      %13 = vector.load %arg5[%c0_12, %c0_13] : memref<1x128xf32, #tpu.memory_space<vmem>>, vector<1x128xf32>
      %14 = vector.broadcast %13 : vector<1x128xf32> to vector<8x128xf32>
      %15 = arith.addf %12, %14 : vector<8x128xf32>
      %cst_14 = arith.constant 0.000000e+00 : f32
      %16 = vector.broadcast %cst_14 : f32 to vector<8x128xf32>
      %17 = arith.maximumf %15, %16 : vector<8x128xf32>
      %18 = arith.truncf %17 : vector<8x128xf32> to vector<8x128xbf16>
      %c0_15 = arith.constant 0 : index
      %c0_16 = arith.constant 0 : index
      %19 = vector.load %arg6[%c0_15, %c0_16] : memref<8x128xbf16, #tpu.memory_space<vmem>>, vector<8x128xbf16>
      tpu.vector_store %arg6[%c0_15, %c0_16], %18 {strides = array<i32>} : memref<8x128xbf16, #tpu.memory_space<vmem>>, vector<8x128xbf16>,
    } else {
    }
    return
  }
  func.func @transform_0(%arg0: i32, %arg1: i32, %arg2: i32) -> (i32, i32) {
    %c0_i32 = arith.constant 0 : i32
    return %arg1, %arg2 : i32, i32
  }
  func.func @transform_1(%arg0: i32, %arg1: i32, %arg2: i32) -> (i32, i32) {
    %c0_i32 = arith.constant 0 : i32
    return %arg2, %arg0 : i32, i32
  }
  func.func @transform_2(%arg0: i32, %arg1: i32, %arg2: i32) -> (i32, i32) {
    %c0_i32 = arith.constant 0 : i32
    %c0_i32_0 = arith.constant 0 : i32
    return %c0_i32, %arg0 : i32, i32
  }
  func.func @transform_3(%arg0: i32, %arg1: i32, %arg2: i32) -> (i32, i32) {
    %c0_i32 = arith.constant 0 : i32
    return %arg1, %arg0 : i32, i32
  }
}

</mosaic_0001>

<bundles_post_ra>
// kernel: tpu_custom_call.1
= control target key start
LH: loop header
LB: loop body
LE: loop exit
PB: predicated region body
PF: predicated region fallthrough
CT: control target
= control target key end

     0   :  { %8 = vsyncpa [#allocation4], 0  ;;  %s928_s0 = inlined_call_operand.hbm [shape: bf16[16,128], index: 0, kind: input, shape index: {}]   ;;  %s929_s1 = inlined_call_operand.hbm [shape: bf16[128,128], index: 1, kind: input, shape index: {}]   ;;  %s930_s2 = inlined_call_operand.vmem [shape: f32[1,128], index: 2, kind: input, shape index: {}]   ;;  %s931_s3 = inlined_call_operand.hbm [shape: bf16[16,128], index: 3, kind: output, shape index: {}]  }
   0x1   :  { %10 = vsyncpa [#allocation4 + $0x1], 0 }
   0x2   :  { %11 = vsyncpa [#allocation7], 0 }
   0x3   :  { %12 = vsyncpa [#allocation5], 0 }
   0x4   :  { %14 = vsyncpa [#allocation5 + $0x1], 0  ;;  %s782_s12 = smov 0   ;;  %s784_s13 = smov 0  }
   0x5   :  { %s786_s14 = smov 0   ;;  %s788_s15 = smov 0  }
   0x6   :  { %s790_s16 = smov 0   ;;  %s792_s17 = smov 0  }
   0x7 LB: > { %s479_s18 = sadd.s32 4294967295, %s757_s17   ;;  %p481_p0 = scmp.ge.s32.totalorder %s757_s17, 1  ;;  %s757_s17 = sphi %s792_s17, %s20_s17   ;;  %s753_s16 = sphi %s790_s16, %s942_s16   ;;  %s749_s15 = sphi %s788_s15, %s941_s15   ;;  %s745_s14 = sphi %s786_s14, %s940_s14   ;;  %s741_s13 = sphi %s784_s13, %s939_s13   ;;  %s737_s12 = sphi %s782_s12, %s938_s12  }
   0x8   : > { %p814_p1 = scmp.eq.s32.totalorder %s479_s18, 0  ;;  %p154_p2 = scmp.lt.s32.totalorder %s757_s17, 3 }
   0x9   : > { %s169_s22 = sshll.u32 %s929_s1, 4  ;;  %s759_s24 = smov [#allocation6]   ;;  %s170_s22 = int_to_ptr.hbm [resolvable:$true] %s169_s22 }
   0xa   : > { %p822_p3 = pnand %p481_p0, %p154_p2  ;;  %s171_s25 = sshll.u32 %s759_s24, 4  ;;  %s172_s25 = int_to_ptr.vmem [resolvable:$true] %s171_s25 }
   0xb   : > { %p484_p6 = scmp.ge.s32.totalorder %s757_s17, 2  ;;  %s760_s26 = smov 64  }
   0xc   : > { %p543_p4 = pneg %p822_p3  ;;  %s761_s27 = smov 4  }
   0xd   : > { %s480_s28 = sadd.s32 4294967294, %s757_s17   ;;  %s35_s29 = sadd.s32 1, %s753_s16 }
   0xe   : > { %p544_p5 = pnand %p543_p4, %p814_p1  ;;  %s48_s30 = sadd.s32 1, %s745_s14 }
   0xf   : > { %p37_p7 = scmp.ge.s32.totalorder %s35_s29, 2  ;;  %p55_p8 = scmp.ne.s32.totalorder %s745_s14, %s741_s13 }
  0x10   : > { %546 = dma.hbm_to_vmem [thread:$0]  (!%p544_p5), %s170_s22, 1024, %s172_s25, [#allocation7], %s760_s26, %s760_s26, %s761_s27  }
  0x11   : > { %p56_p9 = scmp.eq.s32.totalorder %s757_s17, 0  ;;  %p61_p10 = scmp.ne.s32.totalorder %s741_s13, %s737_s12 }
  0x12   : > { %s944_s29 = smov (%p37_p7, %s35_s29), 0  ;;  %p141_p13 = scmp.eq.s32.totalorder %s479_s18, 1 }
  0x13   : > { %p841_p11 = por %p56_p9, %p55_p8  ;;  %p847_p12 = por %p814_p1, %p61_p10 }
  0x14   : > { %s43_s6 = ssub.s32 %s753_s16, %s944_s29  ;;  %p147_p2 = scmp.eq.s32.totalorder %s480_s28, 1 }
  0x15   : > { %p46_p0 = scmp.eq.s32.totalorder %s43_s6, 0  ;;  %p853_p4 = por %p141_p13, %p55_p8 }
  0x16   : > { %p556_p5 = scmp.lt.s32.totalorder %s757_s17, 2  ;;  %p861_p7 = por %p147_p2, %p61_p10 }
  0x17   : > { %s859_s8 = scalar_select %p46_p0, %s745_s14, %s48_s30  }
  0x18   : > { %s191_s10 = sand.u32 1, %s745_s14   ;;  %s486_s20 = sshll.u32 %s753_s16, 2 }
  0x19   : > { %s485_s11 = sshll.u32 %s191_s10, 2  ;;  %s200_s18 = scalar_lea.hbm %s928_s0, %s486_s20 }
  0x1a   : > { %s195_s24 = scalar_lea.vmem [#allocation3], %s485_s11  ;;  %s202_s26 = sshll.u32 %s200_s18, 4  ;;  %s203_s26 = int_to_ptr.hbm [resolvable:$true] %s202_s26 }
  0x1b   : > { %s204_s25 = sshll.u32 %s195_s24, 4  ;;  %p548_p8 = pnand %p556_p5, %p841_p11  ;;  %s205_s25 = int_to_ptr.vmem [resolvable:$true] %s204_s25 }
  0x1c   : > { %s192_s27 = scalar_lea.sflag [#allocation4], %s191_s10  ;;  %213 = sbr.rel (%p822_p3) target bundleno = 204 (0xcc), region = 32 }
  0x1d   : > { %550 = dma.hbm_to_vmem [thread:$0]  (!%p548_p8), %s203_s26, 64, %s205_s25, %s192_s27  }
  0x1e   : > { %s875_s28 = sand.u32 (!%p822_p3), 1, %s741_s13  }
  0x1f   : > { %s488_s30 = sshll.u32 (!%p822_p3), %s875_s28, 2  ;;  %s216_s6 = scalar_lea.sflag (!%p822_p3), [#allocation4], %s875_s28 }
  0x20   : > { %s219_s11 = scalar_lea.vmem (!%p822_p3), [#allocation3], %s488_s30 }
  0x21   : > { %724 = dma.done.wait (%p847_p12), %s216_s6, 64  }
  0x22   : > { %726 = vsyncadd (%p847_p12), %s216_s6, 4294967232 }
  0x23   : > { %728 = dma.done.wait (%p814_p1), [#allocation7], 1024  }
  0x24   : > { %730 = vsyncadd (%p814_p1), [#allocation7], 4294966272  ;;  %v534_v0 = vld [vmem:[#allocation6 + $0x38] sm:$0xff]  ;;  %v533_v1 = vld [vmem:[#allocation6 + $0x30] sm:$0xff]  ;;  %s524_s19 = sshll.u32 %s749_s15, 2  ;;  %s250_s21 = scalar_lea.vmem [#allocation8], %s488_s30 }
  0x25   : > { %326 = vmatpush.bf16.msra.mxu0 %v534_v0  ;;  %v532_v2 = vld [vmem:[#allocation6 + $0x28] sm:$0xff]  ;;  %v531_v3 = vld [vmem:[#allocation6 + $0x20] sm:$0xff]  ;;  %v530_v4 = vld [vmem:[#allocation6 + $0x18] sm:$0xff]  ;;  %s365_s20 = scalar_lea.hbm %s931_s3, %s524_s19  ;;  %s367_s22 = sshll.u32 %s250_s21, 4  ;;  %s368_s22 = int_to_ptr.vmem [resolvable:$true] %s367_s22 }
  0x26   : > { %v529_v5 = vld [vmem:[#allocation6 + $0x10] sm:$0xff]  ;;  %v528_v6 = vld [vmem:[#allocation6 + $0x8] sm:$0xff]  ;;  %v527_v7 = vld [vmem:[#allocation6] sm:$0xff]  ;;  %s369_s18 = sshll.u32 %s365_s20, 4  ;;  %s354_s15 = scalar_lea.sflag [#allocation5], %s875_s28  ;;  %s370_s18 = int_to_ptr.hbm [resolvable:$true] %s369_s18 }
  0x27   : > { %v261_v8 = vld [vmem:[%s219_s11] sm:$0xf]  ;;  %s685_s24 = sshra.s32 %s370_s18, 4  ;;  %s691_s30 = scalar_lea.hbm %s931_s3, 8  ;;  %s686_s24 = int_to_ptr.hbm [resolvable:$true] %s685_s24 }
  0x28   : > { %v610_v9 = vld [vmem:[%s930_s2] ss:$0 sm:$0xff]  ;;  %s687_s25 = scalar_lea.hbm %s686_s24, 4  ;;  %p692_p10 = scmp.lt.s32.totalorder %s686_s24, %s931_s3 }
  0x29   : > { %327 = vmatpush.bf16.msra.mxu0 %v533_v1  ;;  %p688_p1 = scmp.ne.s32.totalorder %s686_s24, %s687_s25  ;;  %p693_p11 = scmp.lt.s32.totalorder %s691_s30, %s687_s25 }
  0x2b   : > { %p689_p3 = pnand %p688_p1, %p853_p4  ;;  %p694_p12 = por %p693_p11, %p692_p10 }
  0x2d   : > { %328 = vmatpush.bf16.msra.mxu0 %v532_v2  ;;  %p690_p9 = pneg %p689_p3 }
  0x2f   : > { %p695_p13 = pnand %p694_p12, %p690_p9 }
  0x31   : > { %329 = vmatpush.bf16.msra.mxu0 %v531_v3 }
  0x35   : > { %330 = vmatpush.bf16.msra.mxu0 %v530_v4 }
  0x39   : > { %331 = vmatpush.bf16.msra.mxu0 %v529_v5 }
  0x3d   : > { %332 = vmatpush.bf16.msra.mxu0 %v528_v6 }
  0x41   : > { %333 = vmatpush.bf16.msra.mxu0 %v527_v7 }
  0x44   : > { %334 = vmatmul.bf16.vlgmr.msra.gmra.mxu0 %v261_v8 }
  0xc1   : > { %v335_v10 = vpop.f32.mrf.mxu0 }
  0xc2   : > { %v349_v11 = vadd.f32 %v610_v9, %v335_v10 }
  0xc4   : > { %v350_v12 = vmax.f32 %v349_v11, 0.0 }
  0xc6   : > { %v351_v13 = vpack.c.bf16 %v350_v12, %v350_v12 }
  0xc8   : > { %352 = vst [vmem:[%s250_s21] sm:$0xf] %v351_v13 }
  0xc9   : > { %v337_v14 = vpop.f32.mrf.mxu0 }
  0xca   : > { %698 = shalt.err (!%p695_p13)
}
  0xcb   : > { %541 = dma.vmem_to_hbm [thread:$0]  (%p853_p4), %s368_s22, 64, %s370_s18, %s354_s15  }
  0xcc PF: > { %s381_s28 = sand.u32 1, %s737_s12   ;;  %p552_p0 = pnand %p484_p6, %p861_p7 }
  0xcd   : > { %s382_s19 = scalar_lea.sflag [#allocation5], %s381_s28 }
  0xce   : > { %p553_p2 = pneg %p552_p0 }
  0xd0   : > { %732 = dma.done.wait (%p553_p2), %s382_s19, 64  }
  0xd1   : > { %734 = vsyncadd (%p553_p2), %s382_s19, 4294967232  ;;  %s20_s17 = sadd.s32 1, %s757_s17   ;;  %s938_s12 = smov %s741_s13 }
  0xd2   : > { %p17_p5 = scmp.ge.s32.totalorder %s20_s17, 4   ;;  %s939_s13 = smov %s745_s14 }
  0xd3   : > { %s940_s14 = smov %s859_s8  ;;  %s941_s15 = smov %s753_s16 }
  0xd4   : > { %s942_s16 = smov %s944_s29  ;;  %19 = sbr.rel (!%p17_p5) target bundleno = 7 (0x7), region = 93 }
  0xd9   :  { %388 = vsyncpa [#allocation4], 1 }
  0xda   :  { %390 = vsyncpa [#allocation4 + $0x1], 1 }
  0xdb   :  { %391 = vsyncpa [#allocation7], 1 }
  0xdc   :  { %392 = vsyncpa [#allocation5], 1 }
  0xdd   :  { %394 = vsyncpa [#allocation5 + $0x1], 1 }

</bundles_post_ra>
